<compile_context>
chip_gen: v7x
topology: tpu7x:2x2x1
jax: 0.10.0
libtpu: 0.0.40
codegen_flags: <defaults>
</compile_context>

<pallas_src>
import math
import functools

import jax
import jax.numpy as jnp
from jax import lax
from jax.experimental import pallas as pl
from jax.experimental.pallas import tpu as pltpu


def _round_up(v, m):
    return (v + m - 1) // m * m


def _vmem_capacity_bytes():
    """Best-effort trace-time device query; conservative (v7x per-TC) fallback."""
    if hasattr(pltpu, "get_tpu_info"):
        try:
            cap = getattr(pltpu.get_tpu_info(), "vmem_capacity_bytes", None)
            if cap:
                return int(cap)
        except Exception:  # device query only — never masks kernel compile errors
            pass
    return 64 * 2 ** 20


def _mod_linear_block_kernel(x_ref, s1_ref, ds_ref, d2_ref, w1_ref, w2_ref, o_ref,
                             *, slope, apply_skip):
    """One (batch b, points-tile n) grid step.

    x_ref : (1, TN, Ci)  activations, original dtype (cast per-tile here)
    s1_ref: (1, 1, Ci)   f32 per-batch input modulation (style proj 1)
    ds_ref: (1, 1, Co)   f32 per-batch demod1 * style-modulation 2 (folded)
    d2_ref: (1, 1, Co)   f32 per-batch demod2
    w1_ref: (Ci, Co)     grid-constant (scale1 * W1)^T, matmul dtype
    w2_ref: (Co, Co)     grid-constant (scale2 * W2)^T, matmul dtype
    """
    # linear1: LeakyReLU(d1 * ((x*s1) @ w1t)) == d1 * LeakyReLU((x*s1) @ w1t), d1>0
    xs = (x_ref[0].astype(jnp.float32) * s1_ref[0]).astype(w1_ref.dtype)
    h = jnp.dot(xs, w1_ref[...], preferred_element_type=jnp.float32)
    h = jnp.maximum(h, slope * h)                       # LeakyReLU(0.2)

    # linear2: d1 folded into ds = d1*s2 (one VPU pass instead of two)
    hs = (h * ds_ref[0]).astype(w2_ref.dtype)
    y = jnp.dot(hs, w2_ref[...], preferred_element_type=jnp.float32) * d2_ref[0]
    y = jnp.maximum(y, slope * y)

    if apply_skip:   # static: skip requested and out_dim == in_dim
        # Re-read x from VMEM — no long-lived (TN, Ci) f32 copy across the matmuls.
        y = y + x_ref[0].astype(jnp.float32)
    o_ref[0] = y.astype(o_ref.dtype)


def mod_linear_block(x, style0, style1, params, *, skip=False, eps=1e-4,
                     tile_n=None, matmul_dtype=jnp.bfloat16, out_dtype=None):
    """x: (B, N, in_dim); style0/style1: (B, style_dim). Returns (B, N, out_dim).

    tile_n       : optional cap on rows of x per grid step (auto-sized from VMEM
                   capacity by default: large on 128 MiB v5e/v6e, capped for v7x).
    matmul_dtype : MXU operand dtype for the two contractions (bf16 default;
                   accumulation and all elementwise modulation math stay f32).
    out_dtype    : output dtype (default x.dtype; bf16 halves writeback bytes).
    """
    B, N, in_dim = x.shape
    out_dim = params["w1"].shape[0]
    style_dim = params["wm1"].shape[1]
    apply_skip = bool(skip) and (out_dim == in_dim)
    if out_dtype is None:
        out_dtype = x.dtype
    f32 = jnp.float32

    mod_scale = 1.0 / math.sqrt(style_dim)           # EqualLinear scale
    scale1 = 1.0 / math.sqrt(in_dim)                 # Modulated_FC_Conv scale (scale=None)
    scale2 = 1.0 / math.sqrt(out_dim)

    # -------- tiny XLA-side prep (hoisted out of the kernel) --------
    s1 = (style0.astype(f32) @ params["wm1"].astype(f32).T) * mod_scale + params["bm1"].astype(f32)
    s2 = (style1.astype(f32) @ params["wm2"].astype(f32).T) * mod_scale + params["bm2"].astype(f32)
    w1t = (params["w1"].astype(f32) * scale1).T      # (in_dim,  out_dim), pre-scaled & transposed
    w2t = (params["w2"].astype(f32) * scale2).T      # (out_dim, out_dim)
    # demod = rsqrt(sum_i (scale*W[o,i]*s[b,i])^2 + eps); scale^2 lives inside w1t^2.
    d1 = lax.rsqrt((s1 * s1) @ (w1t * w1t) + eps)    # (B, out_dim)
    d2 = lax.rsqrt((s2 * s2) @ (w2t * w2t) + eps)    # (B, out_dim)
    ds = d1 * s2                                     # fold: LeakyReLU(d1*m) == d1*LeakyReLU(m)

    # -------- TPU-friendly shapes & tile selection --------
    ci = _round_up(in_dim, 128)
    co = _round_up(out_dim, 128)
    x_bytes = jnp.dtype(x.dtype).itemsize
    mm_bytes = jnp.dtype(matmul_dtype).itemsize
    out_bytes = jnp.dtype(out_dtype).itemsize

    vmem_cap = _vmem_capacity_bytes()
    budget = min(int(vmem_cap * 0.6), 96 * 2 ** 20)
    max_tile = 2048 if vmem_cap <= 80 * 2 ** 20 else 4096   # v7x (64 MiB) vs v5e/v6e (128 MiB)
    if tile_n is not None:
        max_tile = int(tile_n)

    # Per-row VMEM: double-buffered x/out pipeline tiles + in-kernel scratch
    # (xs matmul-dtype, h f32, hs matmul-dtype, y f32).
    per_row = (2 * ci * x_bytes + 2 * co * out_bytes
               + ci * mm_bytes + co * (4 + mm_bytes + 4))
    w_bytes = 2 * (ci * co + co * co) * mm_bytes     # weight blocks (2 buffers each)
    avail = max(budget - w_bytes - (1 << 20), per_row * 8)
    tn = min(max_tile, avail // per_row, _round_up(N, 8))
    tn = max(8, (int(tn) // 8) * 8)
    n_pad = _round_up(N, tn)

    # -------- padding only where required (no-op HBM-wise for aligned shapes) --------
    if n_pad != N or ci != in_dim:
        x_p = jnp.pad(x, ((0, 0), (0, n_pad - N), (0, ci - in_dim)))
    else:
        x_p = x

    def pad_vec(v, c):
        if v.shape[1] != c:
            v = jnp.pad(v, ((0, 0), (0, c - v.shape[1])))
        return v[:, None, :].astype(f32)             # (B, 1, c)

    def pad_w(w, r, c):
        if w.shape != (r, c):
            w = jnp.pad(w, ((0, r - w.shape[0]), (0, c - w.shape[1])))
        return w.astype(matmul_dtype)

    s1_p = pad_vec(s1, ci)
    ds_p = pad_vec(ds, co)
    d2_p = pad_vec(d2, co)
    w1t_p = pad_w(w1t, ci, co)
    w2t_p = pad_w(w2t, co, co)

    grid = (B, n_pad // tn)
    kernel = functools.partial(_mod_linear_block_kernel, slope=0.2, apply_skip=apply_skip)

    # VMEM limit from the same accounting (pipeline buffers + weights + scratch + slack).
    vmem_est = tn * per_row + w_bytes + 4 * (ci + 2 * co) * 4 + (1 << 20)
    vmem_limit = int(min(max(vmem_est + (8 << 20), 32 << 20),
                         max(vmem_cap - (4 << 20), 32 << 20)))

    # Advisory cost estimate for XLA's scheduler.
    flops = 2 * B * n_pad * (ci * co + co * co) + 6 * B * n_pad * co
    bytes_accessed = (B * n_pad * (ci * x_bytes + co * out_bytes)
                      + (ci * co + co * co) * mm_bytes
                      + B * (ci + 2 * co) * 4)
    cost = pl.CostEstimate(flops=int(flops), transcendentals=0,
                           bytes_accessed=int(bytes_accessed))

    out_p = pl.pallas_call(
        kernel,
        out_shape=jax.ShapeDtypeStruct((B, n_pad, co), out_dtype),
        grid_spec=pltpu.PrefetchScalarGridSpec(
            num_scalar_prefetch=0,
            grid=grid,
            in_specs=[
                pl.BlockSpec((1, tn, ci), lambda b, n: (b, n, 0)),   # x tile
                pl.BlockSpec((1, 1, ci), lambda b, n: (b, 0, 0)),    # s1 (per batch)
                pl.BlockSpec((1, 1, co), lambda b, n: (b, 0, 0)),    # ds = d1*s2
                pl.BlockSpec((1, 1, co), lambda b, n: (b, 0, 0)),    # d2
                pl.BlockSpec((ci, co), lambda b, n: (0, 0)),         # (scale1*W1)^T, grid-constant
                pl.BlockSpec((co, co), lambda b, n: (0, 0)),         # (scale2*W2)^T, grid-constant
            ],
            out_specs=pl.BlockSpec((1, tn, co), lambda b, n: (b, n, 0)),
        ),
        compiler_params=pltpu.CompilerParams(
            dimension_semantics=("parallel", "parallel"),
            vmem_limit_bytes=vmem_limit),
        cost_estimate=cost,
    )(x_p, s1_p, ds_p, d2_p, w1t_p, w2t_p)

    if n_pad != N or co != out_dim:
        out_p = out_p[:, :N, :out_dim]
    return out_p


def _reference(x, style0, style1, params, *, skip, eps=1e-4):
    """Pure-JAX reference mirroring the PyTorch forward."""
    def mod_fc(h, style, wm, bm, w, scale):
        mod_scale = 1.0 / math.sqrt(wm.shape[1])
        s = style @ wm.T * mod_scale + bm                       # (B, in)
        wmod = scale * w[None, :, :] * s[:, None, :]            # (B, out, in)
        demod = lax.rsqrt(jnp.sum(wmod * wmod, axis=2, keepdims=True) + eps)
        wmod = wmod * demod
        return jnp.einsum("bni,boi->bno", h, wmod)

    in_dim = x.shape[-1]
    out_dim = params["w1"].shape[0]
    h = mod_fc(x, style0, params["wm1"], params["bm1"], params["w1"], 1.0 / math.sqrt(in_dim))
    h = jnp.where(h >= 0, h, 0.2 * h)
    y = mod_fc(h, style1, params["wm2"], params["bm2"], params["w2"], 1.0 / math.sqrt(out_dim))
    y = jnp.where(y >= 0, y, 0.2 * y)
    if skip and out_dim == in_dim:
        y = y + x
    return y


if __name__ == "__main__":
    B, N = 2, 16
    in_dim, out_dim, style_dim = 32, 32, 16

    key = jax.random.PRNGKey(0)
    ks = jax.random.split(key, 7)
    x = jax.random.normal(ks[0], (B, N, in_dim), jnp.float32)
    style0 = jax.random.normal(ks[1], (B, style_dim), jnp.float32)
    style1 = jax.random.normal(ks[2], (B, style_dim), jnp.float32)

    # Deterministic synthetic parameters (shapes per module __init__).
    # TODO(synk): PyTorch init uses kaiming-normal on the main weights; plain normal used here.
    params = {
        "wm1": jax.random.normal(ks[3], (in_dim, style_dim), jnp.float32) * 0.1,
        "bm1": jnp.ones((1, in_dim), jnp.float32),      # EqualLinear bias_init=1
        "w1":  jax.random.normal(ks[4], (out_dim, in_dim), jnp.float32),
        "wm2": jax.random.normal(ks[5], (out_dim, style_dim), jnp.float32) * 0.1,
        "bm2": jnp.ones((1, out_dim), jnp.float32),
        "w2":  jax.random.normal(ks[6], (out_dim, out_dim), jnp.float32),
    }

    ref = _reference(x, style0, style1, params, skip=True)

    # f32-MXU path (bit-close to the reference).
    out_f32 = mod_linear_block(x, style0, style1, params, skip=True,
                               matmul_dtype=jnp.float32)
    jax.block_until_ready(out_f32)
    assert out_f32.shape == (B, N, out_dim)
    assert jnp.allclose(out_f32, ref, atol=1e-4, rtol=1e-4), \
        f"f32 max abs err = {jnp.max(jnp.abs(out_f32 - ref))}"

    # Default (bf16 MXU operands, f32 accumulation / modulation / residual) — looser tol.
    out_bf16 = mod_linear_block(x, style0, style1, params, skip=True)
    jax.block_until_ready(out_bf16)
    assert out_bf16.shape == (B, N, out_dim)
    assert jnp.allclose(out_bf16, ref, atol=1e-1, rtol=1e-1), \
        f"bf16 max abs err = {jnp.max(jnp.abs(out_bf16 - ref))}"

    print("KERNEL_OK")
</pallas_src>

<mosaic_0001>
module attributes {stable_mosaic.version = 11 : i64} {
  func.func @_mod_linear_block_kernel(%arg0: i32, %arg1: i32, %arg2: memref<1x16x128xf32, #tpu.memory_space<vmem>>, %arg3: memref<1x1x128xf32, #tpu.memory_space<vmem>>, %arg4: memref<1x1x128xf32, #tpu.memory_space<vmem>>, %arg5: memref<1x1x128xf32, #tpu.memory_space<vmem>>, %arg6: memref<128x128xf32, #tpu.memory_space<vmem>>, %arg7: memref<128x128xf32, #tpu.memory_space<vmem>>, %arg8: memref<1x16x128xf32, #tpu.memory_space<vmem>>) attributes {dimension_semantics = [#tpu.dimension_semantics<parallel>, #tpu.dimension_semantics<parallel>], iteration_bounds = array<i64: 2, 1>, scalar_prefetch = 0 : i64, scratch_operands = 0 : i64, tpu.core_type = #tpu.core_type<tc>, window_params = [{transform_indices = @transform_0, window_bounds = array<i64: 1, 16, 128>}, {transform_indices = @transform_1, window_bounds = array<i64: 1, 1, 128>}, {transform_indices = @transform_2, window_bounds = array<i64: 1, 1, 128>}, {transform_indices = @transform_3, window_bounds = array<i64: 1, 1, 128>}, {pipeline_mode = #tpu.pipeline_mode<synchronous>, transform_indices = @transform_4, window_bounds = array<i64: 128, 128>}, {pipeline_mode = #tpu.pipeline_mode<synchronous>, transform_indices = @transform_5, window_bounds = array<i64: 128, 128>}, {transform_indices = @transform_6, window_bounds = array<i64: 1, 16, 128>}]} {
    %c0 = arith.constant 0 : index
    %c0_0 = arith.constant 0 : index
    %c0_1 = arith.constant 0 : index
    %0 = vector.load %arg2[%c0, %c0_0, %c0_1] : memref<1x16x128xf32, #tpu.memory_space<vmem>>, vector<1x16x128xf32>
    %1 = vector.shape_cast %0 : vector<1x16x128xf32> to vector<16x128xf32>
    %c0_2 = arith.constant 0 : index
    %c0_3 = arith.constant 0 : index
    %c0_4 = arith.constant 0 : index
    %2 = vector.load %arg3[%c0_2, %c0_3, %c0_4] : memref<1x1x128xf32, #tpu.memory_space<vmem>>, vector<1x1x128xf32>
    %3 = vector.shape_cast %2 : vector<1x1x128xf32> to vector<1x128xf32>
    %4 = vector.broadcast %3 : vector<1x128xf32> to vector<16x128xf32>
    %5 = arith.mulf %1, %4 : vector<16x128xf32>
    %c0_5 = arith.constant 0 : index
    %c0_6 = arith.constant 0 : index
    %6 = vector.load %arg6[%c0_5, %c0_6] : memref<128x128xf32, #tpu.memory_space<vmem>>, vector<128x128xf32>
    %cst = arith.constant dense<0.000000e+00> : vector<16x128xf32>
    %7 = tpu.matmul %5, %6, %cst {dimension_numbers = #tpu.dot_dimension_numbers<[1], [0], [0], [1], [0, 0, 1, 1], [], []>} : vector<16x128xf32>, vector<128x128xf32>, vector<16x128xf32> -> vector<16x128xf32>
    %cst_7 = arith.constant 2.000000e-01 : f32
    %8 = vector.broadcast %cst_7 : f32 to vector<16x128xf32>
    %9 = arith.mulf %8, %7 : vector<16x128xf32>
    %10 = arith.maximumf %7, %9 : vector<16x128xf32>
    %c0_8 = arith.constant 0 : index
    %c0_9 = arith.constant 0 : index
    %c0_10 = arith.constant 0 : index
    %11 = vector.load %arg4[%c0_8, %c0_9, %c0_10] : memref<1x1x128xf32, #tpu.memory_space<vmem>>, vector<1x1x128xf32>
    %12 = vector.shape_cast %11 : vector<1x1x128xf32> to vector<1x128xf32>
    %13 = vector.broadcast %12 : vector<1x128xf32> to vector<16x128xf32>
    %14 = arith.mulf %10, %13 : vector<16x128xf32>
    %c0_11 = arith.constant 0 : index
    %c0_12 = arith.constant 0 : index
    %15 = vector.load %arg7[%c0_11, %c0_12] : memref<128x128xf32, #tpu.memory_space<vmem>>, vector<128x128xf32>
    %cst_13 = arith.constant dense<0.000000e+00> : vector<16x128xf32>
    %16 = tpu.matmul %14, %15, %cst_13 {dimension_numbers = #tpu.dot_dimension_numbers<[1], [0], [0], [1], [0, 0, 1, 1], [], []>} : vector<16x128xf32>, vector<128x128xf32>, vector<16x128xf32> -> vector<16x128xf32>
    %c0_14 = arith.constant 0 : index
    %c0_15 = arith.constant 0 : index
    %c0_16 = arith.constant 0 : index
    %17 = vector.load %arg5[%c0_14, %c0_15, %c0_16] : memref<1x1x128xf32, #tpu.memory_space<vmem>>, vector<1x1x128xf32>
    %18 = vector.shape_cast %17 : vector<1x1x128xf32> to vector<1x128xf32>
    %19 = vector.broadcast %18 : vector<1x128xf32> to vector<16x128xf32>
    %20 = arith.mulf %16, %19 : vector<16x128xf32>
    %cst_17 = arith.constant 2.000000e-01 : f32
    %21 = vector.broadcast %cst_17 : f32 to vector<16x128xf32>
    %22 = arith.mulf %21, %20 : vector<16x128xf32>
    %23 = arith.maximumf %20, %22 : vector<16x128xf32>
    %c0_18 = arith.constant 0 : index
    %c0_19 = arith.constant 0 : index
    %c0_20 = arith.constant 0 : index
    %24 = vector.load %arg2[%c0_18, %c0_19, %c0_20] : memref<1x16x128xf32, #tpu.memory_space<vmem>>, vector<1x16x128xf32>
    %25 = vector.shape_cast %24 : vector<1x16x128xf32> to vector<16x128xf32>
    %26 = arith.addf %23, %25 : vector<16x128xf32>
    %c0_21 = arith.constant 0 : index
    %c0_22 = arith.constant 0 : index
    %c0_23 = arith.constant 0 : index
    %27 = vector.load %arg8[%c0_21, %c0_22, %c0_23] : memref<1x16x128xf32, #tpu.memory_space<vmem>>, vector<1x16x128xf32>
    %28 = vector.shape_cast %27 : vector<1x16x128xf32> to vector<16x128xf32>
    %29 = vector.shape_cast %26 : vector<16x128xf32> to vector<1x16x128xf32>
    tpu.vector_store %arg8[%c0_21, %c0_22, %c0_23], %29 {strides = array<i32>} : memref<1x16x128xf32, #tpu.memory_space<vmem>>, vector<1x16x128xf32>,
    return
  }
  func.func @transform_0(%arg0: i32, %arg1: i32) -> (i32, i32, i32) {
    %c0_i32 = arith.constant 0 : i32
    %c0_i32_0 = arith.constant 0 : i32
    return %arg0, %arg1, %c0_i32 : i32, i32, i32
  }
  func.func @transform_1(%arg0: i32, %arg1: i32) -> (i32, i32, i32) {
    %c0_i32 = arith.constant 0 : i32
    %c0_i32_0 = arith.constant 0 : i32
    %c0_i32_1 = arith.constant 0 : i32
    return %arg0, %c0_i32, %c0_i32_0 : i32, i32, i32
  }
  func.func @transform_2(%arg0: i32, %arg1: i32) -> (i32, i32, i32) {
    %c0_i32 = arith.constant 0 : i32
    %c0_i32_0 = arith.constant 0 : i32
    %c0_i32_1 = arith.constant 0 : i32
    return %arg0, %c0_i32, %c0_i32_0 : i32, i32, i32
  }
  func.func @transform_3(%arg0: i32, %arg1: i32) -> (i32, i32, i32) {
    %c0_i32 = arith.constant 0 : i32
    %c0_i32_0 = arith.constant 0 : i32
    %c0_i32_1 = arith.constant 0 : i32
    return %arg0, %c0_i32, %c0_i32_0 : i32, i32, i32
  }
  func.func @transform_4(%arg0: i32, %arg1: i32) -> (i32, i32) {
    %c0_i32 = arith.constant 0 : i32
    %c0_i32_0 = arith.constant 0 : i32
    %c0_i32_1 = arith.constant 0 : i32
    return %c0_i32, %c0_i32_0 : i32, i32
  }
  func.func @transform_5(%arg0: i32, %arg1: i32) -> (i32, i32) {
    %c0_i32 = arith.constant 0 : i32
    %c0_i32_0 = arith.constant 0 : i32
    %c0_i32_1 = arith.constant 0 : i32
    return %c0_i32, %c0_i32_0 : i32, i32
  }
  func.func @transform_6(%arg0: i32, %arg1: i32) -> (i32, i32, i32) {
    %c0_i32 = arith.constant 0 : i32
    %c0_i32_0 = arith.constant 0 : i32
    return %arg0, %arg1, %c0_i32 : i32, i32, i32
  }
}

</mosaic_0001>

<bundles_post_ra>
// kernel: tpu_custom_call.1
= control target key start
LH: loop header
LB: loop body
LE: loop exit
PB: predicated region body
PF: predicated region fallthrough
CT: control target
= control target key end

     0   :  { %11 = vsyncpa [#allocation3], 0  ;;  %s1523_s0 = inlined_call_operand.hbm [shape: f32[2,16,128], index: 0, kind: input, shape index: {}]   ;;  %s1524_s1 = inlined_call_operand.vmem [shape: f32[2,1,128], index: 1, kind: input, shape index: {}]   ;;  %s1525_s2 = inlined_call_operand.vmem [shape: f32[2,1,128], index: 2, kind: input, shape index: {}]   ;;  %s1526_s3 = inlined_call_operand.vmem [shape: f32[2,1,128], index: 3, kind: input, shape index: {}]   ;;  %s1527_s4 = inlined_call_operand.hbm [shape: f32[128,128], index: 4, kind: input, shape index: {}]   ;;  %s1528_s5 = inlined_call_operand.hbm [shape: f32[128,128], index: 5, kind: input, shape index: {}]   ;;  %s1529_s6 = inlined_call_operand.hbm [shape: f32[2,16,128], index: 6, kind: output, shape index: {}]  }
   0x1   :  { %13 = vsyncpa [#allocation3 + $0x1], 0 }
   0x2   :  { %14 = vsyncpa [#allocation6], 0 }
   0x3   :  { %15 = vsyncpa [#allocation4], 0 }
   0x4   :  { %17 = vsyncpa [#allocation4 + $0x1], 0  ;;  %s1231_s21 = smov 0   ;;  %s1233_s22 = smov 0  }
   0x5   :  { %s1235_s23 = smov 0   ;;  %s1237_s24 = smov 0  }
   0x6   :  { %s1239_s25 = smov 0   ;;  %s1241_s26 = smov 0  }
   0x7 LB: > { %s733_s27 = sadd.s32 4294967295, %s1186_s26   ;;  %s734_s28 = sadd.s32 4294967294, %s1186_s26   ;;  %s1186_s26 = sphi %s1241_s26, %s23_s26   ;;  %s1182_s25 = sphi %s1239_s25, %s1556_s25   ;;  %s1178_s24 = sphi %s1237_s24, %s1555_s24   ;;  %s1174_s23 = sphi %s1235_s23, %s1554_s23   ;;  %s1170_s22 = sphi %s1233_s22, %s1553_s22   ;;  %s1166_s21 = sphi %s1231_s21, %s1552_s21  }
   0x8   : > { %p57_p0 = scmp.ne.s32.totalorder %s1170_s22, %s1166_s21  ;;  %p1265_p1 = scmp.eq.s32.totalorder %s733_s27, 0 }
   0x9   : > { %p1269_p2 = scmp.eq.s32.totalorder %s733_s27, 1  ;;  %p209_p3 = scmp.eq.s32.totalorder %s734_s28, 1 }
   0xa   : > { %s1536_s29 = scalar_select %p1265_p1, 1, 0 }
   0xb   : > { %p1275_p4 = por %p1265_p1, %p57_p0  ;;  %p735_p5 = scmp.ge.s32.totalorder %s1186_s26, 1 }
   0xc   : > { %p1280_p6 = por %p209_p3, %p57_p0  ;;  %p216_p7 = scmp.lt.s32.totalorder %s1186_s26, 3 }
   0xd   : > { %s1538_s7 = scalar_select %p1275_p4, 1, 0 }
   0xe   : > { %s1539_s8 = scalar_select %p1280_p6, 1, 0 }
   0xf   : > { %p1285_p8 = pnand %p735_p5, %p216_p7  ;;  %s1188_s10 = smov [#allocation5]  }
  0x10   : > { %1540 = sst [smem:[#allocation12_spill]] %s1539_s8  ;;  %s228_s11 = sshll.u32 %s1188_s10, 4  ;;  %s1289_s11 = int_to_ptr.vmem [resolvable:$true] %s228_s11 }
  0x11   : > { %p939_p9 = pneg %p1285_p8  ;;  %s1189_s13 = smov [#allocation7]  }
  0x12   : > { %s241_s14 = sshll.u32 %s1189_s13, 4  ;;  %s1014_s17 = scalar_lea.hbm %s1527_s4, 2048  ;;  %s1300_s14 = int_to_ptr.vmem [resolvable:$true] %s241_s14 }
  0x13   : > { %p1296_p11 = pnand %p939_p9, %p1265_p1  ;;  %p1015_p12 = scmp.ne.s32.totalorder %s1527_s4, %s1014_s17 }
  0x14   : > { %p1021_p5 = scmp.lt.u32.totalorder %s1014_s17, %s1527_s4 }
  0x15   : > { %p1016_p13 = pneg %p1296_p11 }
  0x17   : > { %p1017_p0 = pnand %p1016_p13, %p1015_p12 }
  0x19   : > { %p1018_p3 = pneg %p1017_p0 }
  0x1b   : > { %p1023_p7 = pnand %p1021_p5, %p1018_p3 }
  0x1d   : > { %1026 = shalt.err (!%p1023_p7)
}
  0x1e   : > { %s1027_s28 = scalar_lea.vmem %s1289_s11, 2048  ;;  %p1035_p1 = scmp.lt.s32.totalorder %s1289_s11, %s1289_s11 }
  0x1f   : > { %p1028_p9 = scmp.ne.s32.totalorder %s1289_s11, %s1027_s28  ;;  %p1036_p12 = scmp.lt.s32.totalorder %s1027_s28, %s1027_s28 }
  0x21   : > { %p1030_p10 = pnand %p1028_p9, %p1016_p13  ;;  %p1037_p0 = por %p1036_p12, %p1035_p1 }
  0x23   : > { %p1031_p6 = pneg %p1030_p10 }
  0x25   : > { %p1038_p4 = pnand %p1037_p0, %p1031_p6 }
  0x27   : > { %1041 = shalt.err (!%p1038_p4)
}
  0x28   : > { %s1534_s10 = smov 128   ;;  %s1191_s13 = smov 8  }
  0x29   : > { %942 = dma.hbm_to_vmem [thread:$0]  (!%p1296_p11), %s1527_s4, 2048, %s1289_s11, [#allocation6], %s1534_s10, %s1534_s10, %s1191_s13  }
  0x2a   : > { %s1042_s19 = scalar_lea.hbm %s1528_s5, 2048 }
  0x2b   : > { %p1043_p1 = scmp.ne.s32.totalorder %s1528_s5, %s1042_s19  ;;  %p1049_p10 = scmp.lt.u32.totalorder %s1042_s19, %s1528_s5 }
  0x2d   : > { %p1045_p4 = pnand %p1043_p1, %p1016_p13 }
  0x2f   : > { %p1046_p6 = pneg %p1045_p4 }
  0x31   : > { %p1051_p3 = pnand %p1049_p10, %p1046_p6 }
  0x33   : > { %1054 = shalt.err (!%p1051_p3)
}
  0x34   : > { %s1055_s11 = scalar_lea.vmem %s1300_s14, 2048  ;;  %p1063_p12 = scmp.lt.s32.totalorder %s1300_s14, %s1300_s14 }
  0x35   : > { %p1056_p5 = scmp.ne.s32.totalorder %s1300_s14, %s1055_s11  ;;  %p1064_p0 = scmp.lt.s32.totalorder %s1055_s11, %s1055_s11 }
  0x37   : > { %p1058_p7 = pnand %p1056_p5, %p1016_p13  ;;  %p1065_p1 = por %p1064_p0, %p1063_p12 }
  0x39   : > { %p1059_p9 = pneg %p1058_p7 }
  0x3b   : > { %p1066_p4 = pnand %p1065_p1, %p1059_p9 }
  0x3d   : > { %1069 = shalt.err (!%p1066_p4)
}
  0x3e   : > { %945 = dma.hbm_to_vmem [thread:$0]  (!%p1296_p11), %s1528_s5, 2048, %s1300_s14, [#allocation6], %s1534_s10, %s1534_s10, %s1191_s13  }
  0x3f   : > { %s35_s12 = sadd.s32 1, %s1182_s25  ;;  %s44_s16 = sadd.s32 1, %s1174_s23 }
  0x40   : > { %p37_p13 = scmp.ge.s32.totalorder %s35_s12, 2  ;;  %p51_p6 = scmp.ne.s32.totalorder %s1174_s23, %s1170_s22 }
  0x41   : > { %p52_p10 = scmp.eq.s32.totalorder %s1186_s26, 0  ;;  %p956_p3 = scmp.lt.s32.totalorder %s1186_s26, 2 }
  0x42   : > { %s1558_s12 = smov (%p37_p13, %s35_s12), 0  ;;  %p1370_p7 = por %p1269_p2, %p51_p6 }
  0x43   : > { %p53_p5 = por %p52_p10, %p51_p6  ;;  %s39_s18 = ssub.s32 %s1182_s25, %s1558_s12 }
  0x44   : > { %s1543_s17 = scalar_select %p1370_p7, 1, 0 }
  0x45   : > { %s255_s19 = sand.u32 1, %s1174_s23   ;;  %p42_p9 = scmp.eq.s32.totalorder %s39_s18, 0 }
  0x46   : > { %s739_s14 = sshll.u32 %s255_s19, 4  ;;  %s755_s20 = sshll.u32 %s1182_s25, 8 }
  0x47   : > { %s1379_s27 = scalar_select %p42_p9, %s1174_s23, %s44_s16  }
  0x48   : > { %s1384_s8 = scalar_lea.hbm %s1523_s0, %s755_s20  ;;  %s259_s30 = scalar_lea.vmem [#allocation2], %s739_s14 }
  0x49   : > { %s268_s15 = sshll.u32 %s259_s30, 4  ;;  %p1388_p2 = pnand %p956_p3, %p53_p5  ;;  %s1392_s15 = int_to_ptr.vmem [resolvable:$true] %s268_s15 }
  0x4a   : > { %s1394_s16 = scalar_lea.sflag [#allocation3], %s255_s19  ;;  %s1070_s18 = scalar_lea.hbm %s1384_s8, 256 }
  0x4b   : > { %p1071_p11 = scmp.ne.s32.totalorder %s1384_s8, %s1070_s18  ;;  %p1072_p12 = pneg %p1388_p2 }
  0x4c   : > { %s1075_s28 = scalar_lea.hbm %s1523_s0, 512  ;;  %p1076_p4 = scmp.lt.u32.totalorder %s1384_s8, %s1523_s0 }
  0x4d   : > { %p1073_p0 = pnand %p1072_p12, %p1071_p11  ;;  %p1077_p13 = scmp.lt.u32.totalorder %s1075_s28, %s1070_s18 }
  0x4e   : > { %p1079_p10 = scmp.lt.u32.totalorder %s1070_s18, %s1384_s8 }
  0x4f   : > { %p1074_p1 = pneg %p1073_p0  ;;  %p1078_p6 = por %p1077_p13, %p1076_p4 }
  0x51   : > { %p1080_p3 = por %p1079_p10, %p1078_p6 }
  0x53   : > { %p1081_p5 = pnand %p1080_p3, %p1074_p1 }
  0x55   : > { %1084 = shalt.err (!%p1081_p5)
}
  0x56   : > { %s1085_s19 = scalar_lea.vmem %s1392_s15, 256  ;;  %s1192_s14 = smov [#allocation2]  }
  0x57   : > { %p1086_p9 = scmp.ne.s32.totalorder %s1392_s15, %s1085_s19  ;;  %s1090_s20 = sshll.u32 %s1192_s14, 4  ;;  %s1091_s20 = int_to_ptr.vmem [resolvable:$false] %s1090_s20 }
  0x58   : > { %s1092_s11 = scalar_lea.vmem %s1091_s20, 512  ;;  %p1093_p7 = scmp.lt.s32.totalorder %s1392_s15, %s1091_s20 }
  0x59   : > { %p1088_p11 = pnand %p1086_p9, %p1072_p12  ;;  %p1094_p4 = scmp.lt.s32.totalorder %s1092_s11, %s1085_s19 }
  0x5b   : > { %p1089_p0 = pneg %p1088_p11  ;;  %p1095_p13 = por %p1094_p4, %p1093_p7 }
  0x5d   : > { %p1096_p6 = pnand %p1095_p13, %p1089_p0 }
  0x5f   : > { %1099 = shalt.err (!%p1096_p6)
}
  0x60   : > { %s1545_s18 = smov 128   ;;  %298 = sbr.rel (%p1285_p8) target bundleno = 598 (0x256), region = 44 }
  0x61   : > { %949 = dma.hbm_to_vmem [thread:$0]  (!%p1388_p2), %s1384_s8, 256, %s1392_s15, %s1394_s16, %s1545_s18, %s1545_s18, %s1191_s13  }
  0x62   : > { %s1428_s28 = sand.u32 (!%p1285_p8), 1, %s1170_s22   ;;  %p1546_p7 = scmp.ne.s32.totalorder (!%p1285_p8), %s1538_s7, 0 }
  0x63   : > { %s743_s30 = sshll.u32 (!%p1285_p8), %s1428_s28, 4  ;;  %s301_s19 = scalar_lea.sflag (!%p1285_p8), [#allocation3], %s1428_s28 }
  0x64   : > { %s1434_s10 = scalar_lea.vmem (!%p1285_p8), [#allocation2], %s743_s30 }
  0x67   : > { %1153 = dma.done.wait (%p1546_p7), %s301_s19, 256  }
  0x68   : > { %1155 = vsyncadd (%p1546_p7), %s301_s19, 4294967040  ;;  %p1547_p2 = scmp.ne.s32.totalorder %s1536_s29, 0 }
  0x6a   : > { %1157 = dma.done.wait (%p1547_p2), [#allocation6], 4096  }
  0x6b   : > { %1159 = vsyncadd (%p1547_p2), [#allocation6], 4294963200  ;;  %p351_p8 = scmp.lt.s32.totalorder %s1178_s24, 1  ;;  %v372_v0 = vld [vmem:[#allocation5] sm:$0xff]  ;;  %v373_v1 = vld [vmem:[#allocation5 + $0x8] sm:$0xff]  ;;  %s349_s18 = scalar_lea.vmem [#allocation8], %s743_s30 }
  0x6c   : > { %v374_v2 = vld [vmem:[#allocation5 + $0x10] sm:$0xff]  ;;  %v863_v3 = vpack.c.bf16 %v373_v1, %v372_v0  ;;  %v375_v4 = vld [vmem:[#allocation5 + $0x18] sm:$0xff]  ;;  %v376_v6 = vld [vmem:[#allocation5 + $0x20] sm:$0xff]  ;;  %s600_s19 = sshll.u32 %s349_s18, 4  ;;  %s585_s30 = scalar_lea.sflag [#allocation4], %s1428_s28  ;;  %s1468_s19 = int_to_ptr.vmem [resolvable:$true] %s600_s19 }
  0x6d   : > { %s1446_s9 = scalar_select %p351_p8, %s1178_s24, 1  ;;  %v867_v5 = vpack.c.bf16 %v375_v4, %v374_v2  ;;  %v377_v7 = vld [vmem:[#allocation5 + $0x28] sm:$0xff]  ;;  %v378_v9 = vld [vmem:[#allocation5 + $0x30] sm:$0xff]  ;;  %v379_v10 = vld [vmem:[#allocation5 + $0x38] sm:$0xff] }
  0x6e   : > { %864 = vmatprep.subr.bf16.mxu0 %v863_v3  ;;  %v871_v8 = vpack.c.bf16 %v377_v7, %v376_v6  ;;  %v1453_v11 = vld [vmem:[%s1434_s10] sm:$0xff]  ;;  %v477_v14 = vld [vmem:[#allocation7 + $0x8] sm:$0xff]  ;;  %v479_v18 = vld [vmem:[#allocation7 + $0x18] sm:$0xff]  ;;  %v875_v20 = vpack.c.bf16 %v379_v10, %v378_v9  ;;  %p1548_p1 = scmp.ne.s32.totalorder %s1543_s17, 0 }
  0x6f   : > { %s353_s29 = scalar_lea.vmem %s1524_s1, %s1446_s9  ;;  %866 = vmatpush3.bf16.msra.mxu0 %v863_v3  ;;  %v476_v13 = vld [vmem:[#allocation7] sm:$0xff]  ;;  %v478_v17 = vld [vmem:[#allocation7 + $0x10] sm:$0xff]  ;;  %v481_v22 = vld [vmem:[#allocation7 + $0x28] sm:$0xff]  ;;  %s356_s16 = scalar_lea.vmem %s1525_s2, %s1446_s9 }
  0x70   : > { %868 = vmatprep.subr.bf16.mxu0 %v867_v5  ;;  %v747_v12 = vld [vmem:[%s353_s29] ss:$0 sm:$0xff]  ;;  %v895_v16 = vpack.c.bf16 %v477_v14, %v476_v13  ;;  %v899_v19 = vpack.c.bf16 %v479_v18, %v478_v17  ;;  %v381_v24 = vld [vmem:[#allocation5 + $0x48] sm:$0xff]  ;;  %v482_v27 = vld [vmem:[#allocation7 + $0x30] sm:$0xff]  ;;  %s359_s11 = scalar_lea.vmem %s1526_s3, %s1446_s9  ;;  %s1100_s29 = scalar_lea.vmem %s1468_s19, 256 }
  0x71   : > { %v370_v15 = vmul.f32 %v747_v12, %v1453_v11  ;;  %v480_v21 = vld [vmem:[#allocation7 + $0x20] sm:$0xff]  ;;  %v483_v28 = vld [vmem:[#allocation7 + $0x38] sm:$0xff]  ;;  %v382_v29 = vld [vmem:[#allocation5 + $0x50] sm:$0xff]  ;;  %p1101_p12 = scmp.ne.s32.totalorder %s1468_s19, %s1100_s29 }
  0x72   : > { %v380_v23 = vld [vmem:[#allocation5 + $0x40] sm:$0xff]  ;;  %896 = vmatprep.subr.bf16.mxu1 %v895_v16  ;;  %v903_v25 = vpack.c.bf16 %v481_v22, %v480_v21  ;;  %v383_v30 = vld [vmem:[#allocation5 + $0x58] sm:$0xff]  ;;  %v907_v31 = vpack.c.bf16 %v483_v28, %v482_v27  ;;  %v485_v34 = vld [vmem:[#allocation7 + $0x48] sm:$0xff] }
  0x73   : > { %870 = vmatpush3.bf16.msra.mxu0 %v867_v5  ;;  %825 = vmatprep.mubr.f32.mxu0 %v370_v15  ;;  %v879_v26 = vpack.c.bf16 %v381_v24, %v380_v23  ;;  %v883_v32 = vpack.c.bf16 %v383_v30, %v382_v29  ;;  %v484_v33 = vld [vmem:[#allocation7 + $0x40] sm:$0xff]  ;;  %v385_v36 = vld [vmem:[#allocation5 + $0x68] sm:$0xff]  ;;  %v486_v39 = vld [vmem:[#allocation7 + $0x50] sm:$0xff]  ;;  %p1102_p10 = pnand %p1101_p12, %p1548_p1 }
  0x74   : > { %872 = vmatprep.subr.bf16.mxu0 %v871_v8  ;;  %898 = vmatpush3.bf16.msra.mxu1 %v895_v16  ;;  %v384_v35 = vld [vmem:[#allocation5 + $0x60] sm:$0xff]  ;;  %v911_v37 = vpack.c.bf16 %v485_v34, %v484_v33  ;;  %v487_v40 = vld [vmem:[#allocation7 + $0x58] sm:$0xff]  ;;  %v386_v41 = vld [vmem:[#allocation5 + $0x70] sm:$0xff] }
  0x75   : > { %900 = vmatprep.subr.bf16.mxu1 %v899_v19  ;;  %v887_v38 = vpack.c.bf16 %v385_v36, %v384_v35  ;;  %v387_v42 = vld [vmem:[#allocation5 + $0x78] sm:$0xff]  ;;  %v915_v43 = vpack.c.bf16 %v487_v40, %v486_v39  ;;  %v488_v47 = vld [vmem:[#allocation7 + $0x60] sm:$0xff]  ;;  %v489_v48 = vld [vmem:[#allocation7 + $0x68] sm:$0xff]  ;;  %p1103_p3 = pneg %p1102_p10 }
  0x76   : > { %v891_v44 = vpack.c.bf16 %v387_v42, %v386_v41  ;;  %v362_v45 = vld [vmem:[%s1434_s10 + $0x8] sm:$0xff]  ;;  %v919_v49 = vpack.c.bf16 %v489_v48, %v488_v47  ;;  %v490_v50 = vld [vmem:[#allocation7 + $0x70] sm:$0xff]  ;;  %v748_v58 = vld [vmem:[%s356_s16] ss:$0 sm:$0xff]  ;;  %s756_s10 = sshll.u32 %s1178_s24, 8  ;;  %s1193_s24 = smov [#allocation8]  }
  0x77   : > { %874 = vmatpush3.bf16.msra.mxu0 %v871_v8  ;;  %v371_v46 = vmul.f32 %v747_v12, %v362_v45  ;;  %v491_v51 = vld [vmem:[#allocation7 + $0x78] sm:$0xff]  ;;  %v749_v62 = vld [vmem:[%s359_s11] ss:$0 sm:$0xff]  ;;  %s1473_s13 = scalar_lea.hbm %s1529_s6, %s756_s10  ;;  %s1104_s8 = sshll.u32 %s1193_s24, 4  ;;  %s1105_s8 = int_to_ptr.vmem [resolvable:$false] %s1104_s8 }
  0x78   : > { %876 = vmatprep.subr.bf16.mxu0 %v875_v20  ;;  %902 = vmatpush3.bf16.msra.mxu1 %v899_v19  ;;  %v923_v52 = vpack.c.bf16 %v491_v51, %v490_v50  ;;  %s1106_s15 = scalar_lea.vmem %s1105_s8, 512  ;;  %p1107_p5 = scmp.lt.s32.totalorder %s1468_s19, %s1105_s8 }
  0x79   : > { %904 = vmatprep.subr.bf16.mxu1 %v903_v25  ;;  %p1108_p9 = scmp.lt.s32.totalorder %s1106_s15, %s1100_s29 }
  0x7b   : > { %878 = vmatpush3.bf16.msra.mxu0 %v875_v20  ;;  %p1109_p11 = por %p1108_p9, %p1107_p5 }
  0x7c   : > { %880 = vmatprep.subr.bf16.mxu0 %v879_v26  ;;  %906 = vmatpush3.bf16.msra.mxu1 %v903_v25 }
  0x7d   : > { %908 = vmatprep.subr.bf16.mxu1 %v907_v31  ;;  %p1110_p0 = pnand %p1109_p11, %p1103_p3 }
  0x7f   : > { %882 = vmatpush3.bf16.msra.mxu0 %v879_v26 }
  0x80   : > { %884 = vmatprep.subr.bf16.mxu0 %v883_v32  ;;  %910 = vmatpush3.bf16.msra.mxu1 %v907_v31 }
  0x81   : > { %912 = vmatprep.subr.bf16.mxu1 %v911_v37 }
  0x83   : > { %886 = vmatpush3.bf16.msra.mxu0 %v883_v32 }
  0x84   : > { %888 = vmatprep.subr.bf16.mxu0 %v887_v38  ;;  %914 = vmatpush3.bf16.msra.mxu1 %v911_v37 }
  0x85   : > { %916 = vmatprep.subr.bf16.mxu1 %v915_v43 }
  0x87   : > { %890 = vmatpush3.bf16.msra.mxu0 %v887_v38 }
  0x88   : > { %892 = vmatprep.subr.bf16.mxu0 %v891_v44  ;;  %918 = vmatpush3.bf16.msra.mxu1 %v915_v43 }
  0x89   : > { %920 = vmatprep.subr.bf16.mxu1 %v919_v49 }
  0x8b   : > { %894 = vmatpush3.bf16.msra.mxu0 %v891_v44 }
  0x8c   : > { %922 = vmatpush3.bf16.msra.mxu1 %v919_v49 }
  0x8d   : > { %924 = vmatprep.subr.bf16.mxu1 %v923_v52 }
  0x8e   : > { %826 = vmatmul.mubr.f32.vlgmr.msra.gmra.mrb[0].mxu0 %v371_v46 }
  0x90   : > { %926 = vmatpush3.bf16.msra.mxu1 %v923_v52 }
 0x161   : > { %v827_v53 = vpop.f32.mrb[0].mxu0 }
 0x162   : > { %v464_v54 = vmul.f32 0.2, %v827_v53  ;;  %v454_v55 = vpop.f32.mrb[1].mxu0 }
 0x163   : > { %v463_v56 = vmul.f32 0.2, %v454_v55 }
 0x164   : > { %v466_v57 = vmax.f32 %v827_v53, %v464_v54 }
 0x165   : > { %v465_v59 = vmax.f32 %v454_v55, %v463_v56 }
 0x166   : > { %v475_v61 = vmul.f32 %v748_v58, %v466_v57 }
 0x167   : > { %v474_v60 = vmul.f32 %v748_v58, %v465_v59 }
 0x169   : > { %860 = vmatprep.mubr.f32.mxu1 %v474_v60 }
 0x16a   : > { %861 = vmatmul.mubr.f32.vlgmr.msra.gmra.mrb[0].mxu1 %v475_v61 }
 0x23d   : > { %v862_v63 = vpop.f32.mrb[0].mxu1 }
 0x23e   : > { %v575_v0 = vmul.f32 %v862_v63, %v749_v62  ;;  %v558_v1 = vpop.f32.mrb[1].mxu1 }
 0x23f   : > { %v574_v2 = vmul.f32 %v749_v62, %v558_v1 }
 0x240   : > { %v577_v3 = vmul.f32 0.2, %v575_v0 }
 0x241   : > { %v576_v4 = vmul.f32 0.2, %v574_v2 }
 0x242   : > { %v579_v5 = vmax.f32 %v575_v0, %v577_v3 }
 0x243   : > { %v578_v6 = vmax.f32 %v574_v2, %v576_v4 }
 0x244   : > { %v581_v7 = vadd.f32 %v579_v5, %v362_v45 }
 0x245   : > { %v580_v8 = vadd.f32 %v578_v6, %v1453_v11 }
 0x246   : > { %583 = vst [vmem:[%s349_s18 + $0x8] sm:$0xff] %v581_v7 }
 0x247   : > { %582 = vst [vmem:[%s349_s18] sm:$0xff] %v580_v8 }
 0x248   : > { %1113 = shalt.err (!%p1110_p0)
}
 0x249   : > { %s1114_s16 = scalar_lea.hbm %s1473_s13, 256  ;;  %s1118_s11 = scalar_lea.hbm %s1529_s6, 512 }
 0x24a   : > { %p1115_p4 = scmp.ne.s32.totalorder %s1473_s13, %s1114_s16  ;;  %p1119_p7 = scmp.lt.u32.totalorder %s1473_s13, %s1529_s6 }
 0x24b   : > { %p1120_p2 = scmp.lt.u32.totalorder %s1118_s11, %s1114_s16  ;;  %p1122_p12 = scmp.lt.u32.totalorder %s1114_s16, %s1473_s13 }
 0x24c   : > { %p1116_p13 = pnand %p1115_p4, %p1548_p1 }
 0x24d   : > { %p1121_p8 = por %p1120_p2, %p1119_p7 }
 0x24e   : > { %p1117_p6 = pneg %p1116_p13 }
 0x24f   : > { %p1123_p10 = por %p1122_p12, %p1121_p8 }
 0x251   : > { %p1124_p3 = pnand %p1123_p10, %p1117_p6 }
 0x253   : > { %1127 = shalt.err (!%p1124_p3)
}
 0x254   : > { %s1194_s9 = smov 128   ;;  %s1195_s7 = smov 8  }
 0x255   : > { %937 = dma.vmem_to_hbm [thread:$0]  (%p1548_p1), %s1468_s19, 256, %s1473_s13, %s585_s30, %s1194_s9, %s1194_s9, %s1195_s7  }
 0x256 PF: > { %s1549_s29 = sld [smem:[#allocation12_spill]]  ;;  %s615_s24 = sand.u32 1, %s1166_s21  }
 0x257   : > { %p1551_p9 = scmp.ge.s32.totalorder %s1186_s26, 2  ;;  %s616_s8 = scalar_lea.sflag [#allocation4], %s615_s24 }
 0x25c   : > { %p1550_p5 = scmp.ne.s32.totalorder %s1549_s29, 0 }
 0x25e   : > { %p951_p11 = pnand %p1551_p9, %p1550_p5 }
 0x260   : > { %1161 = dma.done.wait (!%p951_p11), %s616_s8, 256  }
 0x261   : > { %1163 = vsyncadd (!%p951_p11), %s616_s8, 4294967040  ;;  %s23_s26 = sadd.s32 1, %s1186_s26   ;;  %s1552_s21 = smov %s1170_s22 }
 0x262   : > { %p20_p0 = scmp.ge.s32.totalorder %s23_s26, 4   ;;  %s1553_s22 = smov %s1174_s23 }
 0x263   : > { %s1554_s23 = smov %s1379_s27  ;;  %s1555_s24 = smov %s1182_s25 }
 0x264   : > { %s1556_s25 = smov %s1558_s12  ;;  %22 = sbr.rel (!%p20_p0) target bundleno = 7 (0x7), region = 106 }
 0x26b   :  { %621 = vsyncpa [#allocation3], 1 }
 0x26c   :  { %623 = vsyncpa [#allocation3 + $0x1], 1 }
 0x26d   :  { %624 = vsyncpa [#allocation6], 1 }
 0x26e   :  { %625 = vsyncpa [#allocation4], 1 }
 0x26f   :  { %627 = vsyncpa [#allocation4 + $0x1], 1 }

</bundles_post_ra>
